<compile_context>
chip_gen: v7x
topology: tpu7x:2x2x1
jax: 0.10.0
libtpu: 0.0.40
codegen_flags: <defaults>
</compile_context>

<pallas_src>
import numpy as np
import jax
import jax.numpy as jnp
from jax.experimental import pallas as pl
from jax.experimental.pallas import tpu as pltpu


def _round_up(n, m):
    return ((n + m - 1) // m) * m


def _round_down(n, m):
    return (n // m) * m


# Kernel operands (per grid step i over batch tiles of TB rows):
#   embed_ref : (TB, F*E)   bf16   gathered+flattened embeddings
#   wide_ref  : (1, TB)     f32    pre-reduced wide part + all output biases
#   w1_ref    : (F*E, H1p)  bf16   BN1-folded weights (H1 zero-padded to 128k)
#   b1_ref    : (1, H1p)    f32    BN1-folded bias
#   w2_ref    : (H1p, H2p)  bf16   BN2-folded weights
#   b2_ref    : (1, H2p)    f32    BN2-folded bias
#   wo_ref    : (1, H2p)    bf16   output-layer weights (row vector)
#   out_ref   : (1, TB)     f32    lane-dense result (batch on lanes)
def _wide_deep_kernel(embed_ref, wide_ref, w1_ref, b1_ref, w2_ref, b2_ref,
                      wo_ref, out_ref):
    x = embed_ref[...]                                                   # (TB, F*E) bf16

    # Layer 1: Linear (+ folded BN) + ReLU; accumulate / elementwise in f32.
    h = jnp.dot(x, w1_ref[...], preferred_element_type=jnp.float32) + b1_ref[...]
    h = jnp.maximum(h, 0.0).astype(jnp.bfloat16)

    # Layer 2: Linear (+ folded BN) + ReLU.
    h = jnp.dot(h, w2_ref[...], preferred_element_type=jnp.float32) + b2_ref[...]
    h = jnp.maximum(h, 0.0).astype(jnp.bfloat16)

    # Output layer (H2 -> 1), computed transposed so the result is lane-dense:
    # (1, H2p) x (TB, H2p)^T -> (1, TB).
    deep = jax.lax.dot_general(
        wo_ref[...], h,
        dimension_numbers=(((1,), (1,)), ((), ())),
        preferred_element_type=jnp.float32)

    out_ref[...] = deep + wide_ref[...]


def _vmem_capacity_bytes():
    """Per-TensorCore VMEM capacity; conservative 64 MiB (v7x) if unqueryable."""
    try:
        cap = int(pltpu.get_tpu_info().vmem_capacity_bytes)
        return min(max(cap, 32 << 20), 128 << 20)
    except Exception:
        return 64 << 20


_MIN_BUFFERED1_BYTES = 1 << 20


def _const_spec(shape, nbytes):
    """BlockSpec for a grid-invariant operand; single-buffer it when large.

    Constant index_map means double-buffering buys nothing; dropping to one
    buffer frees VMEM that directly raises the batch tile (matters on v7x).
    """
    index_map = lambda i: (0,) * len(shape)
    if nbytes >= _MIN_BUFFERED1_BYTES:
        try:
            return pl.BlockSpec(shape, index_map, pipeline_mode=pl.Buffered(1))
        except (AttributeError, TypeError):
            pass
    return pl.BlockSpec(shape, index_map)


def wide_and_deep_forward(x_idx, params, *, tb=8192):
    """x_idx: int32 (B, num_fields). Returns float32 (B,)."""
    B, F = x_idx.shape
    E = params["table_deep"].shape[1]
    FE = F * E
    H1 = params["w1"].shape[1]
    H2 = params["w2"].shape[1]

    # ---- batch-tile selection (VMEM-budget- and megacore-aware) -----------
    vmem_budget = (_vmem_capacity_bytes() * 3) // 4          # leave headroom
    w_bytes = FE * H1 * 2 + H1 * 4 + H1 * H2 * 2 + H2 * 4 + H2 * 2
    # Per batch row: double-buffered bf16 embeddings + f32 wide/out lane rows.
    row_bytes = 2 * FE * 2 + 2 * 4 + 2 * 4
    avail = max(vmem_budget - 2 * w_bytes - (2 << 20), 128 * row_bytes)
    tb_vmem = max(128, _round_down(avail // row_bytes, 128))

    B128 = _round_up(max(B, 1), 128)
    if B128 >= 256:
        # Guarantee >= 2 grid steps so ("parallel",) can use both v7x TCs.
        tb_split = max(128, _round_down(B128 // 2, 128))
    else:
        tb_split = B128
    TB = max(128, _round_down(min(tb, tb_vmem, tb_split), 128))
    B_pad = _round_up(B, TB)

    if B_pad != B:
        x_idx = jnp.pad(x_idx, ((0, B_pad - B), (0, 0)))     # pad rows with valid index 0

    # ---- gathers (split tables -> no extra HBM round trip) ----------------
    # NOTE: jnp.take clips out-of-range indices (PyTorch nn.Embedding would raise).
    idx = x_idx + params["offsets"][None, :]                              # (B_pad, F)
    emb = jnp.take(params["table_deep"], idx, axis=0)                     # (B_pad, F, E) bf16
    embed_flat = emb.reshape(B_pad, FE)                                   # contiguous view
    # Wide part in f32: sum over fields + (linear bias + output-layer bias).
    wide_row = (jnp.sum(jnp.take(params["table_wide"], idx, axis=0), axis=1)
                + params["out_bias"]).reshape(1, B_pad)                   # (1, B_pad) f32

    out = pl.pallas_call(
        _wide_deep_kernel,
        out_shape=jax.ShapeDtypeStruct((1, B_pad), jnp.float32),
        grid_spec=pltpu.PrefetchScalarGridSpec(
            num_scalar_prefetch=0,
            grid=(B_pad // TB,),
            in_specs=[
                pl.BlockSpec((TB, FE), lambda i: (i, 0)),    # embeddings: tiled over batch
                pl.BlockSpec((1, TB), lambda i: (0, i)),     # wide row:   tiled over lanes
                _const_spec((FE, H1), FE * H1 * 2),          # grid-invariant weights
                _const_spec((1, H1), H1 * 4),
                _const_spec((H1, H2), H1 * H2 * 2),
                _const_spec((1, H2), H2 * 4),
                _const_spec((1, H2), H2 * 2),
            ],
            out_specs=pl.BlockSpec((1, TB), lambda i: (0, i)),
        ),
        compiler_params=pltpu.CompilerParams(
            dimension_semantics=("parallel",),               # shard batch tiles across TCs
            vmem_limit_bytes=int(vmem_budget),
        ),
    )(embed_flat, wide_row, params["w1"], params["b1"],
      params["w2"], params["b2"], params["wo_row"])

    return out[0, :B]                                                     # squeeze(1)


def _fold_bn(gamma, beta, mean, var, eps=1e-5):
    s = gamma / jnp.sqrt(var + eps)
    t = beta - mean * s
    return s, t


def make_params(key, field_dims, embed_dim, mlp_dims):
    field_dims = np.asarray(field_dims)
    n_feats = int(field_dims.sum())
    offsets = jnp.asarray(np.concatenate(([0], np.cumsum(field_dims)[:-1])),
                          dtype=jnp.int32)
    embed_out = len(field_dims) * embed_dim

    keys = jax.random.split(key, 16)
    # FeaturesEmbedding: xavier_uniform init
    xav = float(np.sqrt(6.0 / (n_feats + embed_dim)))
    emb_weight = jax.random.uniform(keys[0], (n_feats, embed_dim), jnp.float32, -xav, xav)
    # FeaturesLinear: nn.Embedding default init N(0,1), bias zeros
    fc_weight = jax.random.normal(keys[1], (n_feats,), jnp.float32)      # wide column, f32
    lbias = 0.0

    def linear_init(kw, kb, fan_in, fan_out):
        bound = float(1.0 / np.sqrt(fan_in))
        w = jax.random.uniform(kw, (fan_in, fan_out), jnp.float32, -bound, bound)
        b = jax.random.uniform(kb, (fan_out,), jnp.float32, -bound, bound)
        return w, b

    h1, h2 = mlp_dims
    w1, b1 = linear_init(keys[2], keys[3], embed_out, h1)
    w2, b2 = linear_init(keys[4], keys[5], h1, h2)
    wo, bo = linear_init(keys[6], keys[7], h2, 1)

    # BatchNorm1d params + running stats (eval mode)
    g1 = jax.random.uniform(keys[8], (h1,), jnp.float32, 0.5, 1.5)
    be1 = 0.1 * jax.random.normal(keys[9], (h1,), jnp.float32)
    m1 = 0.1 * jax.random.normal(keys[10], (h1,), jnp.float32)
    v1 = jax.random.uniform(keys[11], (h1,), jnp.float32, 0.5, 1.5)
    s1, t1 = _fold_bn(g1, be1, m1, v1)

    g2 = jax.random.uniform(keys[12], (h2,), jnp.float32, 0.5, 1.5)
    be2 = 0.1 * jax.random.normal(keys[13], (h2,), jnp.float32)
    m2 = 0.1 * jax.random.normal(keys[14], (h2,), jnp.float32)
    v2 = jax.random.uniform(keys[15], (h2,), jnp.float32, 0.5, 1.5)
    s2, t2 = _fold_bn(g2, be2, m2, v2)

    # Fold BN scale/shift into the Linear weights/biases (eval mode), then
    # zero-pad hidden dims to multiples of 128 (exact through ReLU and the
    # zero-padded output weights) for full MXU / lane utilization.
    h1p, h2p = _round_up(h1, 128), _round_up(h2, 128)
    w1f = jnp.zeros((embed_out, h1p), jnp.float32).at[:, :h1].set(w1 * s1[None, :])
    b1f = jnp.zeros((1, h1p), jnp.float32).at[0, :h1].set(b1 * s1 + t1)
    w2f = jnp.zeros((h1p, h2p), jnp.float32).at[:h1, :h2].set(w2 * s2[None, :])
    b2f = jnp.zeros((1, h2p), jnp.float32).at[0, :h2].set(b2 * s2 + t2)
    wo_row = jnp.zeros((1, h2p), jnp.float32).at[0, :h2].set(wo[:, 0])
    out_bias = bo[0] + lbias                                  # scalar, folded into wide row

    return dict(
        offsets=offsets,
        table_deep=emb_weight.astype(jnp.bfloat16),           # (n_feats, E)  bf16
        table_wide=fc_weight,                                 # (n_feats,)    f32
        w1=w1f.astype(jnp.bfloat16), b1=b1f,
        w2=w2f.astype(jnp.bfloat16), b2=b2f,
        wo_row=wo_row.astype(jnp.bfloat16),
        out_bias=out_bias,
    )


def reference_forward(x_idx, params):
    """Pure-JAX reference with the same (bf16 weights, f32 accumulate) numerics."""
    idx = x_idx + params["offsets"][None, :]
    emb = jnp.take(params["table_deep"], idx, axis=0)                     # (B, F, E) bf16
    B = emb.shape[0]
    flat = emb.reshape(B, -1)
    h = jnp.dot(flat, params["w1"], preferred_element_type=jnp.float32) + params["b1"]
    h = jnp.maximum(h, 0.0).astype(jnp.bfloat16)
    h = jnp.dot(h, params["w2"], preferred_element_type=jnp.float32) + params["b2"]
    h = jnp.maximum(h, 0.0).astype(jnp.bfloat16)
    deep = jnp.sum(h.astype(jnp.float32) * params["wo_row"].astype(jnp.float32), axis=1)
    wide = (jnp.sum(jnp.take(params["table_wide"], idx, axis=0), axis=1)
            + params["out_bias"])
    return wide + deep                                                    # (B,)


if __name__ == "__main__":
    field_dims = np.array([10, 20, 30, 40])
    embed_dim = 16
    mlp_dims = (32, 16)
    batch = 8

    key = jax.random.PRNGKey(0)
    pkey, xkey = jax.random.split(key)
    params = make_params(pkey, field_dims, embed_dim, mlp_dims)

    # categorical indices within each field's cardinality
    xkeys = jax.random.split(xkey, len(field_dims))
    cols = [jax.random.randint(xkeys[f], (batch,), 0, int(d), dtype=jnp.int32)
            for f, d in enumerate(field_dims)]
    x_idx = jnp.stack(cols, axis=1)                                       # (B, num_fields) int32

    out = jax.block_until_ready(jax.jit(wide_and_deep_forward)(x_idx, params))
    ref = jax.block_until_ready(reference_forward(x_idx, params))

    assert out.shape == (batch,)
    np.testing.assert_allclose(np.asarray(out), np.asarray(ref), rtol=2e-4, atol=2e-4)
    print("KERNEL_OK")
</pallas_src>

<mosaic_0001>
module attributes {stable_mosaic.version = 11 : i64} {
  func.func @_wide_deep_kernel(%arg0: i32, %arg1: memref<128x64xbf16, #tpu.memory_space<vmem>>, %arg2: memref<1x128xf32, #tpu.memory_space<vmem>>, %arg3: memref<64x128xbf16, #tpu.memory_space<vmem>>, %arg4: memref<1x128xf32, #tpu.memory_space<vmem>>, %arg5: memref<128x128xbf16, #tpu.memory_space<vmem>>, %arg6: memref<1x128xf32, #tpu.memory_space<vmem>>, %arg7: memref<1x128xbf16, #tpu.memory_space<vmem>>, %arg8: memref<1x128xf32, #tpu.memory_space<vmem>>) attributes {dimension_semantics = [#tpu.dimension_semantics<parallel>], iteration_bounds = array<i64: 1>, scalar_prefetch = 0 : i64, scratch_operands = 0 : i64, tpu.core_type = #tpu.core_type<tc>, window_params = [{transform_indices = @transform_0, window_bounds = array<i64: 128, 64>}, {transform_indices = @transform_1, window_bounds = array<i64: 1, 128>}, {pipeline_mode = #tpu.pipeline_mode<synchronous>, transform_indices = @transform_2, window_bounds = array<i64: 64, 128>}, {pipeline_mode = #tpu.pipeline_mode<synchronous>, transform_indices = @transform_3, window_bounds = array<i64: 1, 128>}, {pipeline_mode = #tpu.pipeline_mode<synchronous>, transform_indices = @transform_4, window_bounds = array<i64: 128, 128>}, {pipeline_mode = #tpu.pipeline_mode<synchronous>, transform_indices = @transform_5, window_bounds = array<i64: 1, 128>}, {pipeline_mode = #tpu.pipeline_mode<synchronous>, transform_indices = @transform_6, window_bounds = array<i64: 1, 128>}, {transform_indices = @transform_7, window_bounds = array<i64: 1, 128>}]} {
    %c0 = arith.constant 0 : index
    %c0_0 = arith.constant 0 : index
    %0 = vector.load %arg1[%c0, %c0_0] : memref<128x64xbf16, #tpu.memory_space<vmem>>, vector<128x64xbf16>
    %c0_1 = arith.constant 0 : index
    %c0_2 = arith.constant 0 : index
    %1 = vector.load %arg3[%c0_1, %c0_2] : memref<64x128xbf16, #tpu.memory_space<vmem>>, vector<64x128xbf16>
    %cst = arith.constant dense<0.000000e+00> : vector<128x128xf32>
    %2 = tpu.matmul %0, %1, %cst {dimension_numbers = #tpu.dot_dimension_numbers<[1], [0], [0], [1], [0, 0, 1, 1], [], []>} : vector<128x64xbf16>, vector<64x128xbf16>, vector<128x128xf32> -> vector<128x128xf32>
    %c0_3 = arith.constant 0 : index
    %c0_4 = arith.constant 0 : index
    %3 = vector.load %arg4[%c0_3, %c0_4] : memref<1x128xf32, #tpu.memory_space<vmem>>, vector<1x128xf32>
    %4 = vector.broadcast %3 : vector<1x128xf32> to vector<128x128xf32>
    %5 = arith.addf %2, %4 : vector<128x128xf32>
    %cst_5 = arith.constant 0.000000e+00 : f32
    %6 = vector.broadcast %cst_5 : f32 to vector<128x128xf32>
    %7 = arith.maximumf %5, %6 : vector<128x128xf32>
    %8 = arith.truncf %7 : vector<128x128xf32> to vector<128x128xbf16>
    %c0_6 = arith.constant 0 : index
    %c0_7 = arith.constant 0 : index
    %9 = vector.load %arg5[%c0_6, %c0_7] : memref<128x128xbf16, #tpu.memory_space<vmem>>, vector<128x128xbf16>
    %cst_8 = arith.constant dense<0.000000e+00> : vector<128x128xf32>
    %10 = tpu.matmul %8, %9, %cst_8 {dimension_numbers = #tpu.dot_dimension_numbers<[1], [0], [0], [1], [0, 0, 1, 1], [], []>} : vector<128x128xbf16>, vector<128x128xbf16>, vector<128x128xf32> -> vector<128x128xf32>
    %c0_9 = arith.constant 0 : index
    %c0_10 = arith.constant 0 : index
    %11 = vector.load %arg6[%c0_9, %c0_10] : memref<1x128xf32, #tpu.memory_space<vmem>>, vector<1x128xf32>
    %12 = vector.broadcast %11 : vector<1x128xf32> to vector<128x128xf32>
    %13 = arith.addf %10, %12 : vector<128x128xf32>
    %cst_11 = arith.constant 0.000000e+00 : f32
    %14 = vector.broadcast %cst_11 : f32 to vector<128x128xf32>
    %15 = arith.maximumf %13, %14 : vector<128x128xf32>
    %16 = arith.truncf %15 : vector<128x128xf32> to vector<128x128xbf16>
    %c0_12 = arith.constant 0 : index
    %c0_13 = arith.constant 0 : index
    %17 = vector.load %arg7[%c0_12, %c0_13] : memref<1x128xbf16, #tpu.memory_space<vmem>>, vector<1x128xbf16>
    %cst_14 = arith.constant dense<0.000000e+00> : vector<1x128xf32>
    %18 = tpu.matmul %17, %16, %cst_14 {dimension_numbers = #tpu.dot_dimension_numbers<[1], [1], [0], [0], [0, 0, 1, 0], [], []>} : vector<1x128xbf16>, vector<128x128xbf16>, vector<1x128xf32> -> vector<1x128xf32>
    %c0_15 = arith.constant 0 : index
    %c0_16 = arith.constant 0 : index
    %19 = vector.load %arg2[%c0_15, %c0_16] : memref<1x128xf32, #tpu.memory_space<vmem>>, vector<1x128xf32>
    %20 = arith.addf %18, %19 : vector<1x128xf32>
    %c0_17 = arith.constant 0 : index
    %c0_18 = arith.constant 0 : index
    %21 = vector.load %arg8[%c0_17, %c0_18] : memref<1x128xf32, #tpu.memory_space<vmem>>, vector<1x128xf32>
    tpu.vector_store %arg8[%c0_17, %c0_18], %20 {strides = array<i32>} : memref<1x128xf32, #tpu.memory_space<vmem>>, vector<1x128xf32>,
    return
  }
  func.func @transform_0(%arg0: i32) -> (i32, i32) {
    %c0_i32 = arith.constant 0 : i32
    %c0_i32_0 = arith.constant 0 : i32
    return %arg0, %c0_i32 : i32, i32
  }
  func.func @transform_1(%arg0: i32) -> (i32, i32) {
    %c0_i32 = arith.constant 0 : i32
    %c0_i32_0 = arith.constant 0 : i32
    return %c0_i32, %arg0 : i32, i32
  }
  func.func @transform_2(%arg0: i32) -> (i32, i32) {
    %c0_i32 = arith.constant 0 : i32
    %c0_i32_0 = arith.constant 0 : i32
    %c0_i32_1 = arith.constant 0 : i32
    return %c0_i32, %c0_i32_0 : i32, i32
  }
  func.func @transform_3(%arg0: i32) -> (i32, i32) {
    %c0_i32 = arith.constant 0 : i32
    %c0_i32_0 = arith.constant 0 : i32
    %c0_i32_1 = arith.constant 0 : i32
    return %c0_i32, %c0_i32_0 : i32, i32
  }
  func.func @transform_4(%arg0: i32) -> (i32, i32) {
    %c0_i32 = arith.constant 0 : i32
    %c0_i32_0 = arith.constant 0 : i32
    %c0_i32_1 = arith.constant 0 : i32
    return %c0_i32, %c0_i32_0 : i32, i32
  }
  func.func @transform_5(%arg0: i32) -> (i32, i32) {
    %c0_i32 = arith.constant 0 : i32
    %c0_i32_0 = arith.constant 0 : i32
    %c0_i32_1 = arith.constant 0 : i32
    return %c0_i32, %c0_i32_0 : i32, i32
  }
  func.func @transform_6(%arg0: i32) -> (i32, i32) {
    %c0_i32 = arith.constant 0 : i32
    %c0_i32_0 = arith.constant 0 : i32
    %c0_i32_1 = arith.constant 0 : i32
    return %c0_i32, %c0_i32_0 : i32, i32
  }
  func.func @transform_7(%arg0: i32) -> (i32, i32) {
    %c0_i32 = arith.constant 0 : i32
    %c0_i32_0 = arith.constant 0 : i32
    return %c0_i32, %arg0 : i32, i32
  }
}

</mosaic_0001>

<bundles_post_ra>
// kernel: wide_and_deep_forward.1
= control target key start
LH: loop header
LB: loop body
LE: loop exit
PB: predicated region body
PF: predicated region fallthrough
CT: control target
= control target key end

     0   :  { %vm122_vm0 = vcmask 523264   ;;  %vm673_vm1 = vmmov 0   ;;  %s806_s2 = inlined_call_operand.vmem [shape: bf16[64,128], index: 2, kind: input, shape index: {}]   ;;  %s807_s0 = inlined_call_operand.vmem [shape: bf16[128,64], index: 0, kind: input, shape index: {}]   ;;  %s808_s4 = inlined_call_operand.vmem [shape: bf16[128,128], index: 4, kind: input, shape index: {}]   ;;  %s809_s3 = inlined_call_operand.vmem [shape: f32[1,128], index: 3, kind: input, shape index: {}]   ;;  %s810_s5 = inlined_call_operand.vmem [shape: f32[1,128], index: 5, kind: input, shape index: {}]   ;;  %s811_s6 = inlined_call_operand.vmem [shape: bf16[1,128], index: 6, kind: input, shape index: {}]   ;;  %s812_s1 = inlined_call_operand.vmem [shape: f32[1,128], index: 1, kind: input, shape index: {}]   ;;  %s813_s7 = inlined_call_operand.vmem [shape: f32[1,128], index: 7, kind: output, shape index: {}]  }
   0x1   :  { %v652_v0 = vld [vmem:[%s806_s2] sm:$0xff]   ;;  %v653_v1 = vld [vmem:[%s806_s2 + $0x8] sm:$0xff]   ;;  %v654_v2 = vld [vmem:[%s806_s2 + $0x10] sm:$0xff]  }
   0x2   :  { %574 = vmatprep.subr.bf16.mxu1 %v652_v0  ;;  %v656_v3 = vld [vmem:[%s807_s0] sm:$0xff]   ;;  %v655_v4 = vld [vmem:[%s806_s2 + $0x18] sm:$0xff]   ;;  %v657_v6 = vld [vmem:[%s807_s0 + $0x8] sm:$0xff]  }
   0x3   :  { %575 = vmatpush3.bf16.msra.mxu1 %v652_v0  ;;  %582 = vmatprep.mubr.msk.bf16.mxu1 %vm122_vm0, %v656_v3  ;;  %v664_v5 = vld [vmem:[%s808_s4] sm:$0xff]   ;;  %v658_v7 = vld [vmem:[%s807_s0 + $0x10] sm:$0xff]   ;;  %v665_v8 = vld [vmem:[%s808_s4 + $0x8] sm:$0xff]  }
   0x4   :  { %576 = vmatprep.subr.bf16.mxu1 %v653_v1  ;;  %v666_v9 = vld [vmem:[%s808_s4 + $0x10] sm:$0xff]   ;;  %v659_v10 = vld [vmem:[%s807_s0 + $0x18] sm:$0xff]   ;;  %v660_v11 = vld [vmem:[%s807_s0 + $0x20] sm:$0xff]  }
   0x5   :  { %v667_v12 = vld [vmem:[%s808_s4 + $0x18] sm:$0xff]   ;;  %v668_v13 = vld [vmem:[%s808_s4 + $0x20] sm:$0xff]   ;;  %v661_v14 = vld [vmem:[%s807_s0 + $0x28] sm:$0xff]  }
   0x6   :  { %v662_v15 = vld [vmem:[%s807_s0 + $0x30] sm:$0xff]   ;;  %v669_v16 = vld [vmem:[%s808_s4 + $0x28] sm:$0xff]   ;;  %v663_v17 = vld [vmem:[%s807_s0 + $0x38] sm:$0xff]  }
   0x7   :  { %577 = vmatpush3.bf16.msra.mxu1 %v653_v1  ;;  %v670_v18 = vld [vmem:[%s808_s4 + $0x30] sm:$0xff]   ;;  %v671_v19 = vld [vmem:[%s808_s4 + $0x38] sm:$0xff]   ;;  %v507_v20 = vld [vmem:[%s809_s3] ss:$0 sm:$0xff] }
   0x8   :  { %578 = vmatprep.subr.bf16.mxu1 %v654_v2 }
   0xb   :  { %579 = vmatpush3.bf16.msra.mxu1 %v654_v2 }
   0xc   :  { %580 = vmatprep.subr.bf16.mxu1 %v655_v4 }
   0xf   :  { %581 = vmatpush3.bf16.msra.mxu1 %v655_v4 }
  0x10   :  { %598 = vmatprep.subr.bf16.mxu1 %v664_v5 }
  0x12   :  { %583 = vmatmul.mubr.msk.bf16.vlgmr.msra.gmra.mrb[0].mxu1 %vm122_vm0, %v657_v6 }
  0x13   :  { %586 = vmatprep.mubr.msk.bf16.mxu1 %vm122_vm0, %v658_v7  ;;  %599 = vmatpush3.bf16.msra.mxu1 %v664_v5 }
  0x14   :  { %600 = vmatprep.subr.bf16.mxu1 %v665_v8 }
  0x17   :  { %601 = vmatpush3.bf16.msra.mxu1 %v665_v8 }
  0x18   :  { %602 = vmatprep.subr.bf16.mxu1 %v666_v9 }
  0x1a   :  { %587 = vmatmul.mubr.msk.bf16.gmra.mrb[4].mxu1 %vm122_vm0, %v659_v10 }
  0x1b   :  { %590 = vmatprep.mubr.msk.bf16.mxu1 %vm122_vm0, %v660_v11  ;;  %603 = vmatpush3.bf16.msra.mxu1 %v666_v9 }
  0x1c   :  { %604 = vmatprep.subr.bf16.mxu1 %v667_v12 }
  0x1f   :  { %605 = vmatpush3.bf16.msra.mxu1 %v667_v12 }
  0x20   :  { %606 = vmatprep.subr.bf16.mxu1 %v668_v13 }
  0x22   :  { %591 = vmatmul.mubr.msk.bf16.gmra.mrb[8].mxu1 %vm122_vm0, %v661_v14  ;;  %v528_v14 = vld [vmem:[%s810_s5] ss:$0 sm:$0xff] }
  0x23   :  { %594 = vmatprep.mubr.msk.bf16.mxu1 %vm122_vm0, %v662_v15  ;;  %607 = vmatpush3.bf16.msra.mxu1 %v668_v13  ;;  %v672_v13 = vmov 0.0  }
  0x24   :  { %608 = vmatprep.subr.bf16.mxu1 %v669_v16  ;;  %630 = vmatprep.subr.bf16.mxu0 %v672_v13 }
  0x25   :  { %646 = vmatprep.mubr.msk.bf16.mxu0 %vm673_vm1, %v672_v13 }
  0x27   :  { %609 = vmatpush3.bf16.msra.mxu1 %v669_v16 }
  0x28   :  { %610 = vmatprep.subr.bf16.mxu1 %v670_v18 }
  0x2a   :  { %595 = vmatmul.mubr.msk.bf16.gmra.mrb[12].mxu1 %vm122_vm0, %v663_v17 }
  0x2b   :  { %611 = vmatpush3.bf16.msra.mxu1 %v670_v18 }
  0x2c   :  { %612 = vmatprep.subr.bf16.mxu1 %v671_v19 }
  0x2f   :  { %613 = vmatpush3.bf16.msra.mxu1 %v671_v19 }
  0xe5   :  { %v584_v21 = vpop.f32.mrb[0].mxu1 }
  0xe6   :  { %v190_v22 = vadd.f32 %v584_v21, %v507_v20  ;;  %v181_v23 = vpop.f32.mrb[1].mxu1 }
  0xe7   :  { %v182_v24 = vadd.f32 %v507_v20, %v181_v23  ;;  %v585_v25 = vpop.f32.mrb[2].mxu1 }
  0xe8   :  { %v193_v26 = vadd.f32 %v585_v25, %v507_v20  ;;  %v184_v27 = vpop.f32.mrb[3].mxu1  ;;  %v246_v29 = vmax.f32 %v190_v22, 0.0 }
  0xe9   :  { %v185_v28 = vadd.f32 %v507_v20, %v184_v27  ;;  %v244_v31 = vmax.f32 %v182_v24, 0.0 }
  0xea   :  { %v247_v30 = vmax.f32 %v193_v26, 0.0 }
  0xeb   :  { %v245_v32 = vmax.f32 %v185_v28, 0.0 }
  0xec   :  { %v261_v33 = vpack.c.bf16 %v247_v30, %v246_v29 }
  0xed   :  { %v260_v34 = vpack.c.bf16 %v245_v32, %v244_v31  ;;  %v588_v35 = vpop.f32.mrb[4].mxu1 }
  0xee   :  { %v206_v36 = vadd.f32 %v588_v35, %v507_v20  ;;  %v197_v37 = vpop.f32.mrb[5].mxu1 }
  0xef   :  { %v198_v38 = vadd.f32 %v507_v20, %v197_v37  ;;  %614 = vmatprep.mubr.bf16.mxu1 %v260_v34  ;;  %v589_v39 = vpop.f32.mrb[6].mxu1 }
  0xf0   :  { %v250_v40 = vmax.f32 %v206_v36, 0.0  ;;  %v209_v41 = vadd.f32 %v589_v39, %v507_v20  ;;  %615 = vmatmul.mubr.bf16.vlgmr.msra.gmra.mrb[16].mxu1 %v261_v33  ;;  %v200_v42 = vpop.f32.mrb[7].mxu1 }
  0xf1   :  { %v248_v43 = vmax.f32 %v198_v38, 0.0  ;;  %v201_v44 = vadd.f32 %v507_v20, %v200_v42 }
  0xf2   :  { %v251_v45 = vmax.f32 %v209_v41, 0.0 }
  0xf3   :  { %v249_v46 = vmax.f32 %v201_v44, 0.0 }
  0xf4   :  { %v263_v47 = vpack.c.bf16 %v251_v45, %v250_v40 }
  0xf5   :  { %v262_v48 = vpack.c.bf16 %v249_v46, %v248_v43  ;;  %v592_v49 = vpop.f32.mrb[8].mxu1 }
  0xf6   :  { %v222_v50 = vadd.f32 %v592_v49, %v507_v20  ;;  %v213_v51 = vpop.f32.mrb[9].mxu1 }
  0xf7   :  { %618 = vmatprep.mubr.bf16.mxu1 %v262_v48  ;;  %v214_v52 = vadd.f32 %v507_v20, %v213_v51  ;;  %v593_v53 = vpop.f32.mrb[10].mxu1 }
  0xf8   :  { %619 = vmatmul.mubr.bf16.gmra.mrb[20].mxu1 %v263_v47  ;;  %v254_v54 = vmax.f32 %v222_v50, 0.0  ;;  %v225_v55 = vadd.f32 %v593_v53, %v507_v20  ;;  %v216_v56 = vpop.f32.mrb[11].mxu1 }
  0xf9   :  { %v252_v57 = vmax.f32 %v214_v52, 0.0  ;;  %v217_v58 = vadd.f32 %v507_v20, %v216_v56 }
  0xfa   :  { %v255_v59 = vmax.f32 %v225_v55, 0.0 }
  0xfb   :  { %v253_v60 = vmax.f32 %v217_v58, 0.0 }
  0xfc   :  { %v265_v61 = vpack.c.bf16 %v255_v59, %v254_v54 }
  0xfd   :  { %v264_v62 = vpack.c.bf16 %v253_v60, %v252_v57  ;;  %v596_v63 = vpop.f32.mrb[12].mxu1 }
  0xfe   :  { %v238_v0 = vadd.f32 %v596_v63, %v507_v20  ;;  %v229_v1 = vpop.f32.mrb[13].mxu1 }
  0xff   :  { %622 = vmatprep.mubr.bf16.mxu1 %v264_v62  ;;  %v230_v2 = vadd.f32 %v507_v20, %v229_v1  ;;  %v597_v3 = vpop.f32.mrb[14].mxu1 }
 0x100   :  { %623 = vmatmul.mubr.bf16.gmra.mrb[24].mxu1 %v265_v61  ;;  %v258_v4 = vmax.f32 %v238_v0, 0.0  ;;  %v241_v5 = vadd.f32 %v597_v3, %v507_v20  ;;  %v232_v6 = vpop.f32.mrb[15].mxu1 }
 0x101   :  { %v256_v7 = vmax.f32 %v230_v2, 0.0  ;;  %v233_v8 = vadd.f32 %v507_v20, %v232_v6 }
 0x102   :  { %v259_v9 = vmax.f32 %v241_v5, 0.0 }
 0x103   :  { %v257_v10 = vmax.f32 %v233_v8, 0.0  ;;  %v461_v8 = vld [vmem:[%s812_s1] sm:$0x1] }
 0x104   :  { %v267_v11 = vpack.c.bf16 %v259_v9, %v258_v4 }
 0x105   :  { %v266_v12 = vpack.c.bf16 %v257_v10, %v256_v7  ;;  %v460_v7 = vld [vmem:[%s811_s6] sm:$0x1] }
 0x107   :  { %626 = vmatprep.mubr.bf16.mxu1 %v266_v12 }
 0x108   :  { %627 = vmatmul.mubr.bf16.gmra.mrb[28].mxu1 %v267_v11 }
 0x1c3   :  { %v616_v15 = vpop.f32.mrb[16].mxu1 }
 0x1c4   :  { %v382_v16 = vadd.f32 %v616_v15, %v528_v14  ;;  %v373_v17 = vpop.f32.mrb[17].mxu1 }
 0x1c5   :  { %v374_v18 = vadd.f32 %v528_v14, %v373_v17  ;;  %v617_v19 = vpop.f32.mrb[18].mxu1 }
 0x1c6   :  { %v385_v20 = vadd.f32 %v617_v19, %v528_v14  ;;  %v376_v21 = vpop.f32.mrb[19].mxu1  ;;  %v438_v23 = vmax.f32 %v382_v16, 0.0 }
 0x1c7   :  { %v377_v22 = vadd.f32 %v528_v14, %v376_v21  ;;  %v436_v25 = vmax.f32 %v374_v18, 0.0 }
 0x1c8   :  { %v439_v24 = vmax.f32 %v385_v20, 0.0 }
 0x1c9   :  { %v437_v26 = vmax.f32 %v377_v22, 0.0 }
 0x1ca   :  { %v453_v27 = vpack.c.bf16 %v439_v24, %v438_v23 }
 0x1cb   :  { %v620_v28 = vpop.f32.mrb[20].mxu1  ;;  %v452_v29 = vpack.c.bf16 %v437_v26, %v436_v25 }
 0x1cc   :  { %v398_v30 = vadd.f32 %v620_v28, %v528_v14  ;;  %v389_v31 = vpop.f32.mrb[21].mxu1 }
 0x1cd   :  { %v390_v32 = vadd.f32 %v528_v14, %v389_v31  ;;  %631 = vmatpush3.bf16.xpose.msra.mxu0 %v452_v29  ;;  %v621_v33 = vpop.f32.mrb[22].mxu1 }
 0x1ce   :  { %v442_v34 = vmax.f32 %v398_v30, 0.0  ;;  %v401_v35 = vadd.f32 %v621_v33, %v528_v14  ;;  %v392_v36 = vpop.f32.mrb[23].mxu1  ;;  %632 = vmatprep.subr.bf16.mxu0 %v672_v13 }
 0x1cf   :  { %v440_v37 = vmax.f32 %v390_v32, 0.0  ;;  %v393_v38 = vadd.f32 %v528_v14, %v392_v36 }
 0x1d0   :  { %v443_v39 = vmax.f32 %v401_v35, 0.0 }
 0x1d1   :  { %v441_v40 = vmax.f32 %v393_v38, 0.0 }
 0x1d2   :  { %v455_v41 = vpack.c.bf16 %v443_v39, %v442_v34 }
 0x1d3   :  { %v454_v42 = vpack.c.bf16 %v441_v40, %v440_v37  ;;  %v624_v43 = vpop.f32.mrb[24].mxu1 }
 0x1d4   :  { %v414_v44 = vadd.f32 %v624_v43, %v528_v14  ;;  %v405_v45 = vpop.f32.mrb[25].mxu1 }
 0x1d5   :  { %633 = vmatpush3.bf16.xpose.msra.mxu0 %v453_v27  ;;  %v406_v46 = vadd.f32 %v528_v14, %v405_v45  ;;  %v625_v47 = vpop.f32.mrb[26].mxu1 }
 0x1d6   :  { %v446_v48 = vmax.f32 %v414_v44, 0.0  ;;  %634 = vmatprep.subr.bf16.mxu0 %v672_v13  ;;  %v417_v49 = vadd.f32 %v625_v47, %v528_v14  ;;  %v408_v50 = vpop.f32.mrb[27].mxu1 }
 0x1d7   :  { %v444_v51 = vmax.f32 %v406_v46, 0.0  ;;  %v409_v52 = vadd.f32 %v528_v14, %v408_v50 }
 0x1d8   :  { %v447_v53 = vmax.f32 %v417_v49, 0.0 }
 0x1d9   :  { %v445_v54 = vmax.f32 %v409_v52, 0.0 }
 0x1da   :  { %v457_v55 = vpack.c.bf16 %v447_v53, %v446_v48 }
 0x1db   :  { %v456_v56 = vpack.c.bf16 %v445_v54, %v444_v51  ;;  %v628_v57 = vpop.f32.mrb[28].mxu1 }
 0x1dc   :  { %v430_v58 = vadd.f32 %v628_v57, %v528_v14  ;;  %v421_v59 = vpop.f32.mrb[29].mxu1 }
 0x1dd   :  { %635 = vmatpush3.bf16.xpose.msra.mxu0 %v454_v42  ;;  %v422_v60 = vadd.f32 %v528_v14, %v421_v59  ;;  %v629_v61 = vpop.f32.mrb[30].mxu1 }
 0x1de   :  { %636 = vmatprep.subr.bf16.mxu0 %v672_v13  ;;  %v450_v62 = vmax.f32 %v430_v58, 0.0  ;;  %v433_v63 = vadd.f32 %v629_v61, %v528_v14  ;;  %v424_v0 = vpop.f32.mrb[31].mxu1 }
 0x1df   :  { %v448_v1 = vmax.f32 %v422_v60, 0.0  ;;  %v425_v2 = vadd.f32 %v528_v14, %v424_v0 }
 0x1e0   :  { %v451_v3 = vmax.f32 %v433_v63, 0.0 }
 0x1e1   :  { %v449_v4 = vmax.f32 %v425_v2, 0.0 }
 0x1e2   :  { %v459_v5 = vpack.c.bf16 %v451_v3, %v450_v62 }
 0x1e3   :  { %v458_v6 = vpack.c.bf16 %v449_v4, %v448_v1 }
 0x1e5   :  { %637 = vmatpush3.bf16.xpose.msra.mxu0 %v455_v41 }
 0x1e6   :  { %638 = vmatprep.subr.bf16.mxu0 %v672_v13 }
 0x1ed   :  { %639 = vmatpush3.bf16.xpose.msra.mxu0 %v456_v56 }
 0x1ee   :  { %640 = vmatprep.subr.bf16.mxu0 %v672_v13 }
 0x1f5   :  { %641 = vmatpush3.bf16.xpose.msra.mxu0 %v457_v55 }
 0x1f6   :  { %642 = vmatprep.subr.bf16.mxu0 %v672_v13 }
 0x1fd   :  { %643 = vmatpush3.bf16.xpose.msra.mxu0 %v458_v6 }
 0x1fe   :  { %644 = vmatprep.subr.bf16.mxu0 %v672_v13 }
 0x205   :  { %645 = vmatpush3.bf16.xpose.msra.mxu0 %v459_v5 }
 0x20c   :  { %647 = vmatmul.mubr.bf16.vlgmr.msra.gmra.mrb[0].mxu0 %v460_v7 }
 0x2df   :  { %v496_v9 = vpop.f32.mrb[0].mxu0 }
 0x2e0   :  { %v497_v10 = vadd.f32 %v496_v9, %v461_v8  ;;  %v648_v11 = vpop.f32.mrb[1].mxu0 }
 0x2e1   :  { %v499_v12 = vpop.f32.mrb[2].mxu0 }
 0x2e2   :  { %502 = vst [vmem:[%s813_s7] sm:$0x1] %v497_v10  ;;  %v649_v14 = vpop.f32.mrb[3].mxu0 }

</bundles_post_ra>
